<compile_context>
chip_gen: v7x
topology: tpu7x:2x2x1
jax: 0.10.0
libtpu: 0.0.40
codegen_flags: <defaults>
</compile_context>

<pallas_src>
import functools

import jax
import jax.numpy as jnp
from jax.experimental import pallas as pl
from jax.experimental.pallas import tpu as pltpu


def _round_up(x: int, m: int) -> int:
    return ((x + m - 1) // m) * m


def _pick_tile(dim: int, cap: int) -> int:
    """Largest multiple of 128 that divides `dim` (a multiple of 128), <= cap."""
    best = 128
    t = 128
    while t <= min(dim, cap):
        if dim % t == 0:
            best = t
        t += 128
    return best


def _collapsed_tn(d_pad: int, k_pad: int, p_pad: int, budget: int):
    """Largest feature-tile tn (multiple of 128 dividing d_pad) whose fully
    collapsed-K working set fits in `budget` bytes of VMEM; None if none fits."""
    candidates = [c for c in range(128, d_pad + 1, 128) if d_pad % c == 0]
    for tn in sorted(candidates, reverse=True):
        need = (
            2 * p_pad * k_pad * 2      # bf16 patch slab, double-buffered
            + 2 * k_pad * tn * 2       # bf16 weight tile, double-buffered
            + 2 * tn * 4               # bias
            + 2 * p_pad * 4            # GAP weight row
            + 2 * tn * 4               # pooled output
            + p_pad * tn * 4           # f32 activation temporary
        )
        if need <= budget:
            return tn
    return None


def _ktiled_tiles(d_pad: int, k_pad: int, p_pad: int, budget: int):
    """Pick (tn, tk) for the K-tiled fallback under a VMEM budget."""
    def cost(tn, tk):
        return (
            2 * p_pad * tk * 2         # bf16 patch K-slice, double-buffered
            + 2 * tk * tn * 2          # bf16 weight tile, double-buffered
            + 2 * tn * 4 + 2 * p_pad * 4 + 2 * tn * 4
            + p_pad * tn * 4           # f32 accumulator scratch
            + p_pad * tn * 4           # f32 epilogue activation temporary
        )

    tn = _pick_tile(d_pad, 1024)
    tk = _pick_tile(k_pad, 1024)
    while cost(tn, tk) > budget and tk > 128:
        tk = _pick_tile(k_pad, tk - 128)
    while cost(tn, tk) > budget and tn > 128:
        tn = _pick_tile(d_pad, tn - 128)
    return tn, tk


# --------------------------------------------------------------------------
# Kernel 1a: fully fused patch-embed matmul + bias + ReLU + GAP (K collapsed).
# --------------------------------------------------------------------------
def _backbone_kernel_fused(x_ref, w_ref, b_ref, gapw_ref, pooled_ref):
    # x_ref:      (1, P_pad, K_pad) bf16  full patch slab of one image
    # w_ref:      (K_pad, tn)       bf16  patch-embed weight slice
    # b_ref:      (1, tn)           f32   bias slice
    # gapw_ref:   (1, P_pad)        f32   GAP weights (1/P real rows, 0 pad)
    # pooled_ref: (1, 1, tn)        f32   pooled-feature slice
    act = jnp.maximum(
        jnp.dot(x_ref[0], w_ref[...], preferred_element_type=jnp.float32)
        + b_ref[...],
        0.0,
    )
    pooled_ref[0] = jnp.dot(gapw_ref[...], act,
                            preferred_element_type=jnp.float32)


# --------------------------------------------------------------------------
# Kernel 1b: K-tiled fallback (f32 VMEM accumulator, init/epilogue phases).
# --------------------------------------------------------------------------
def _backbone_kernel_ktiled(x_ref, w_ref, b_ref, gapw_ref, pooled_ref, acc_ref):
    k = pl.program_id(2)

    @pl.when(k == 0)
    def _():
        acc_ref[...] = jnp.zeros_like(acc_ref)

    acc_ref[...] += jnp.dot(
        x_ref[0], w_ref[...], preferred_element_type=jnp.float32
    )

    @pl.when(k == pl.num_programs(2) - 1)
    def _():
        act = jnp.maximum(acc_ref[...] + b_ref[...], 0.0)
        pooled_ref[0] = jnp.dot(gapw_ref[...], act,
                                preferred_element_type=jnp.float32)


def backbone_forward(images, w_patch, b_patch, *, patch_size,
                     vmem_budget_bytes=36 * 1024 * 1024,
                     force_k_tiling=False):
    """Synthetic backbone: patch-embed conv (stride==kernel) + bias + ReLU + GAP.

    images:  [B, C, H, W]  (NCHW, PyTorch convention)
    w_patch: [K, D] with K = ph*pw*C   (K ordering: (ph, pw, C))
    b_patch: [D]
    returns pooled penultimate features [B, D] in f32.
    """
    B, C, H, W = images.shape
    ph = pw = patch_size
    gh, gw = H // ph, W // pw
    P = gh * gw
    K = C * ph * pw
    D = w_patch.shape[1]

    # stride==kernel im2col: single 6-D transpose + reshape.
    # TODO(synk): accepting NHWC input (or doing the patch gather via the
    # kernel's index_map) would avoid materializing this transpose in HBM.
    x = images.reshape(B, C, gh, ph, gw, pw)
    x = jnp.transpose(x, (0, 2, 4, 3, 5, 1))          # [B, gh, gw, ph, pw, C]
    patches = x.reshape(B, P, K)

    # TPU-friendly padding: K, D to lane multiples (128), P to sublane (8).
    K_pad = _round_up(K, 128)
    P_pad = _round_up(P, 8)
    D_pad = _round_up(D, 128)

    # bf16 MXU operands (f32 accumulation inside the kernel).
    patches = jnp.pad(
        patches.astype(jnp.bfloat16), ((0, 0), (0, P_pad - P), (0, K_pad - K))
    )
    w = jnp.pad(
        w_patch.astype(jnp.bfloat16), ((0, K_pad - K), (0, D_pad - D))
    )
    b = jnp.pad(b_patch.astype(jnp.float32), (0, D_pad - D)).reshape(1, D_pad)
    gap_w = jnp.zeros((1, P_pad), jnp.float32).at[0, :P].set(
        jnp.float32(1.0 / P)
    )

    tn_collapsed = None if force_k_tiling else _collapsed_tn(
        D_pad, K_pad, P_pad, vmem_budget_bytes
    )

    if tn_collapsed is not None:
        tn = tn_collapsed
        pooled = pl.pallas_call(
            _backbone_kernel_fused,
            out_shape=jax.ShapeDtypeStruct((B, 1, D_pad), jnp.float32),
            grid_spec=pltpu.PrefetchScalarGridSpec(
                num_scalar_prefetch=0,
                grid=(B, D_pad // tn),  # j innermost: patch slab fetched once/image
                in_specs=[
                    pl.BlockSpec((1, P_pad, K_pad), lambda bi, j: (bi, 0, 0)),
                    pl.BlockSpec((K_pad, tn), lambda bi, j: (0, j)),
                    pl.BlockSpec((1, tn), lambda bi, j: (0, j)),
                    pl.BlockSpec((1, P_pad), lambda bi, j: (0, 0)),
                ],
                out_specs=pl.BlockSpec((1, 1, tn), lambda bi, j: (bi, 0, j)),
            ),
            compiler_params=pltpu.CompilerParams(
                dimension_semantics=("parallel", "parallel"),
                vmem_limit_bytes=48 * 1024 * 1024,
            ),
        )(patches, w, b, gap_w)
    else:
        # Fallback for shapes whose collapsed-K working set exceeds the budget.
        tn, tk = _ktiled_tiles(D_pad, K_pad, P_pad, vmem_budget_bytes)
        pooled = pl.pallas_call(
            _backbone_kernel_ktiled,
            out_shape=jax.ShapeDtypeStruct((B, 1, D_pad), jnp.float32),
            grid_spec=pltpu.PrefetchScalarGridSpec(
                num_scalar_prefetch=0,
                grid=(B, D_pad // tn, K_pad // tk),  # K (reduction) last
                in_specs=[
                    pl.BlockSpec((1, P_pad, tk), lambda bi, j, k: (bi, 0, k)),
                    pl.BlockSpec((tk, tn), lambda bi, j, k: (k, j)),
                    pl.BlockSpec((1, tn), lambda bi, j, k: (0, j)),
                    pl.BlockSpec((1, P_pad), lambda bi, j, k: (0, 0)),
                ],
                out_specs=pl.BlockSpec((1, 1, tn), lambda bi, j, k: (bi, 0, j)),
                scratch_shapes=[pltpu.VMEM((P_pad, tn), jnp.float32)],
            ),
            compiler_params=pltpu.CompilerParams(
                dimension_semantics=("parallel", "parallel", "arbitrary"),
                vmem_limit_bytes=48 * 1024 * 1024,
            ),
        )(patches, w, b, gap_w)

    return pooled.reshape(B, D_pad)[:, :D]


# --------------------------------------------------------------------------
# Kernel 2: fused (optional) added Linear layer + cosine similarity.
# --------------------------------------------------------------------------
def _head_kernel(fab_ref, wl_ref, bl_ref, sim_ref, *, m, eps):
    # fab_ref: (M_pad + N_pad, D_pad) stacked [feats_a ; feats_b] (f32)
    z = (
        jnp.dot(fab_ref[...], wl_ref[...], preferred_element_type=jnp.float32)
        + bl_ref[...]
    )
    inv_n = jax.lax.rsqrt(jnp.sum(z * z, axis=-1, keepdims=True) + eps)
    zn = z * inv_n
    sim_ref[...] = jax.lax.dot_general(
        zn[:m], zn[m:], (((1,), (1,)), ((), ())),
        preferred_element_type=jnp.float32,
    )


def _head_kernel_no_linear(fab_ref, sim_ref, *, m, eps):
    z = fab_ref[...]
    inv_n = jax.lax.rsqrt(jnp.sum(z * z, axis=-1, keepdims=True) + eps)
    zn = z * inv_n
    sim_ref[...] = jax.lax.dot_general(
        zn[:m], zn[m:], (((1,), (1,)), ((), ())),
        preferred_element_type=jnp.float32,
    )


def similarity_head(feats_a, feats_b, w_lin=None, b_lin=None, *, eps=1e-12):
    """Optional added nn.Linear + cosine similarity (eval branch of SNN)."""
    B, D = feats_a.shape
    D_pad = _round_up(D, 128)
    M_pad = _round_up(max(B, 8), 8)      # sublane-dense rows for feats_a
    N_pad = _round_up(max(B, 128), 128)  # lane-dense similarity columns

    fa = jnp.pad(feats_a.astype(jnp.float32), ((0, M_pad - B), (0, D_pad - D)))
    fb = jnp.pad(feats_b.astype(jnp.float32), ((0, N_pad - B), (0, D_pad - D)))
    fab = jnp.concatenate([fa, fb], axis=0)  # one operand -> one Linear matmul

    if w_lin is not None:
        wl = jnp.pad(
            w_lin.astype(jnp.float32), ((0, D_pad - D), (0, D_pad - D))
        )
        bl = jnp.pad(b_lin.astype(jnp.float32), (0, D_pad - D)).reshape(1, D_pad)
        kernel = functools.partial(_head_kernel, m=M_pad, eps=eps)
        args = (fab, wl, bl)
    else:
        kernel = functools.partial(_head_kernel_no_linear, m=M_pad, eps=eps)
        args = (fab,)

    in_specs = [pl.BlockSpec(a.shape, lambda i: (0, 0)) for a in args]
    sim = pl.pallas_call(
        kernel,
        out_shape=jax.ShapeDtypeStruct((M_pad, N_pad), jnp.float32),
        grid=(1,),
        in_specs=in_specs,
        out_specs=pl.BlockSpec((M_pad, N_pad), lambda i: (0, 0)),
        compiler_params=pltpu.CompilerParams(
            vmem_limit_bytes=48 * 1024 * 1024
        ),
    )(*args)
    return sim[:B, :B]


# --------------------------------------------------------------------------
# SNN forward (eval branch): features -> optional linear -> cosine similarity.
# --------------------------------------------------------------------------
def snn_forward_eval(
    input_images, target_images, w_patch, b_patch, w_lin, b_lin, *, patch_size
):
    feats_a = backbone_forward(input_images, w_patch, b_patch, patch_size=patch_size)
    feats_b = backbone_forward(target_images, w_patch, b_patch, patch_size=patch_size)
    # TODO(synk): euclidean_distance similarity option and the training-mode
    # contrastive-loss branch of SNN.forward are not implemented here.
    return similarity_head(feats_a, feats_b, w_lin, b_lin)


# Pure-JAX f32 reference of the same synthetic forward (for correctness check).
def _reference_backbone(x, w_patch, b_patch, patch_size):
    B, C, H, W = x.shape
    p = patch_size
    gh, gw = H // p, W // p
    xx = x.reshape(B, C, gh, p, gw, p)
    xx = jnp.transpose(xx, (0, 2, 4, 3, 5, 1)).reshape(B, gh * gw, p * p * C)
    z = jnp.maximum(xx @ w_patch + b_patch, 0.0)
    return jnp.mean(z, axis=1)


def _reference(input_images, target_images, w_patch, b_patch, w_lin, b_lin,
               patch_size):
    fa = _reference_backbone(input_images, w_patch, b_patch, patch_size)
    fb = _reference_backbone(target_images, w_patch, b_patch, patch_size)
    if w_lin is not None:
        fa = fa @ w_lin + b_lin
        fb = fb @ w_lin + b_lin
    an = fa / jnp.linalg.norm(fa, axis=1, keepdims=True)
    bn = fb / jnp.linalg.norm(fb, axis=1, keepdims=True)
    return an @ bn.T


if __name__ == "__main__":
    key = jax.random.PRNGKey(0)
    B, C, H, W = 2, 4, 16, 16
    patch = 8
    D = 128                      # synthetic embedding dim (penultimate features)
    K = C * patch * patch        # 256

    k1, k2, k3, k4, k5, k6 = jax.random.split(key, 6)
    input_images = jax.random.normal(k1, (B, C, H, W), jnp.float32)
    target_images = jax.random.normal(k2, (B, C, H, W), jnp.float32)
    w_patch = jax.random.normal(k3, (K, D), jnp.float32) * 0.05
    b_patch = jax.random.normal(k4, (D,), jnp.float32) * 0.05
    w_lin = jax.random.normal(k5, (D, D), jnp.float32) * 0.05
    b_lin = jax.random.normal(k6, (D,), jnp.float32) * 0.05

    fwd = jax.jit(functools.partial(snn_forward_eval, patch_size=patch))
    sim = fwd(input_images, target_images, w_patch, b_patch, w_lin, b_lin)
    sim = jax.block_until_ready(sim)

    ref = _reference(
        input_images, target_images, w_patch, b_patch, w_lin, b_lin, patch
    )
    assert sim.shape == (B, B), sim.shape
    # Tolerance accounts for bf16 MXU operands in the backbone (f32 accumulate).
    max_err = float(jnp.max(jnp.abs(sim - ref)))
    assert max_err < 5e-2, f"mismatch vs reference: max abs err = {max_err}"

    # Also exercise the K-tiled fallback path once (used when the collapsed-K
    # working set would exceed the VMEM budget on large shapes).
    feats_kt = jax.block_until_ready(
        jax.jit(
            functools.partial(
                backbone_forward, patch_size=patch, force_k_tiling=True
            )
        )(input_images, w_patch, b_patch)
    )
    feats_ref = _reference_backbone(input_images, w_patch, b_patch, patch)
    max_err_kt = float(jnp.max(jnp.abs(feats_kt - feats_ref)))
    assert max_err_kt < 5e-2, f"K-tiled fallback mismatch: {max_err_kt}"

    print("KERNEL_OK")
</pallas_src>

<mosaic_0001>
module attributes {stable_mosaic.version = 11 : i64} {
  func.func @_backbone_kernel_fused(%arg0: i32, %arg1: i32, %arg2: memref<1x8x256xbf16, #tpu.memory_space<vmem>>, %arg3: memref<256x128xbf16, #tpu.memory_space<vmem>>, %arg4: memref<1x128xf32, #tpu.memory_space<vmem>>, %arg5: memref<1x8xf32, #tpu.memory_space<vmem>>, %arg6: memref<1x1x128xf32, #tpu.memory_space<vmem>>) attributes {dimension_semantics = [#tpu.dimension_semantics<parallel>, #tpu.dimension_semantics<parallel>], iteration_bounds = array<i64: 2, 1>, scalar_prefetch = 0 : i64, scratch_operands = 0 : i64, tpu.core_type = #tpu.core_type<tc>, window_params = [{transform_indices = @transform_0, window_bounds = array<i64: 1, 8, 256>}, {transform_indices = @transform_1, window_bounds = array<i64: 256, 128>}, {transform_indices = @transform_2, window_bounds = array<i64: 1, 128>}, {pipeline_mode = #tpu.pipeline_mode<synchronous>, transform_indices = @transform_3, window_bounds = array<i64: 1, 8>}, {transform_indices = @transform_4, window_bounds = array<i64: 1, 1, 128>}]} {
    %c0 = arith.constant 0 : index
    %c0_0 = arith.constant 0 : index
    %c0_1 = arith.constant 0 : index
    %0 = vector.load %arg2[%c0, %c0_0, %c0_1] : memref<1x8x256xbf16, #tpu.memory_space<vmem>>, vector<1x8x256xbf16>
    %1 = vector.shape_cast %0 : vector<1x8x256xbf16> to vector<8x256xbf16>
    %c0_2 = arith.constant 0 : index
    %c0_3 = arith.constant 0 : index
    %2 = vector.load %arg3[%c0_2, %c0_3] : memref<256x128xbf16, #tpu.memory_space<vmem>>, vector<256x128xbf16>
    %cst = arith.constant dense<0.000000e+00> : vector<8x128xf32>
    %3 = tpu.matmul %1, %2, %cst {dimension_numbers = #tpu.dot_dimension_numbers<[1], [0], [0], [1], [0, 0, 1, 1], [], []>} : vector<8x256xbf16>, vector<256x128xbf16>, vector<8x128xf32> -> vector<8x128xf32>
    %c0_4 = arith.constant 0 : index
    %c0_5 = arith.constant 0 : index
    %4 = vector.load %arg4[%c0_4, %c0_5] : memref<1x128xf32, #tpu.memory_space<vmem>>, vector<1x128xf32>
    %5 = vector.broadcast %4 : vector<1x128xf32> to vector<8x128xf32>
    %6 = arith.addf %3, %5 : vector<8x128xf32>
    %cst_6 = arith.constant 0.000000e+00 : f32
    %7 = vector.broadcast %cst_6 : f32 to vector<8x128xf32>
    %8 = arith.maximumf %6, %7 : vector<8x128xf32>
    %c0_7 = arith.constant 0 : index
    %c0_8 = arith.constant 0 : index
    %9 = vector.load %arg5[%c0_7, %c0_8] : memref<1x8xf32, #tpu.memory_space<vmem>>, vector<1x8xf32>
    %cst_9 = arith.constant dense<0.000000e+00> : vector<1x128xf32>
    %10 = tpu.matmul %9, %8, %cst_9 {dimension_numbers = #tpu.dot_dimension_numbers<[1], [0], [0], [1], [0, 0, 1, 1], [], []>} : vector<1x8xf32>, vector<8x128xf32>, vector<1x128xf32> -> vector<1x128xf32>
    %c0_10 = arith.constant 0 : index
    %c0_11 = arith.constant 0 : index
    %c0_12 = arith.constant 0 : index
    %11 = vector.load %arg6[%c0_10, %c0_11, %c0_12] : memref<1x1x128xf32, #tpu.memory_space<vmem>>, vector<1x1x128xf32>
    %12 = vector.shape_cast %11 : vector<1x1x128xf32> to vector<1x128xf32>
    %13 = vector.shape_cast %10 : vector<1x128xf32> to vector<1x1x128xf32>
    tpu.vector_store %arg6[%c0_10, %c0_11, %c0_12], %13 {strides = array<i32>} : memref<1x1x128xf32, #tpu.memory_space<vmem>>, vector<1x1x128xf32>,
    return
  }
  func.func @transform_0(%arg0: i32, %arg1: i32) -> (i32, i32, i32) {
    %c0_i32 = arith.constant 0 : i32
    %c0_i32_0 = arith.constant 0 : i32
    %c0_i32_1 = arith.constant 0 : i32
    return %arg0, %c0_i32, %c0_i32_0 : i32, i32, i32
  }
  func.func @transform_1(%arg0: i32, %arg1: i32) -> (i32, i32) {
    %c0_i32 = arith.constant 0 : i32
    %c0_i32_0 = arith.constant 0 : i32
    return %c0_i32, %arg1 : i32, i32
  }
  func.func @transform_2(%arg0: i32, %arg1: i32) -> (i32, i32) {
    %c0_i32 = arith.constant 0 : i32
    %c0_i32_0 = arith.constant 0 : i32
    return %c0_i32, %arg1 : i32, i32
  }
  func.func @transform_3(%arg0: i32, %arg1: i32) -> (i32, i32) {
    %c0_i32 = arith.constant 0 : i32
    %c0_i32_0 = arith.constant 0 : i32
    %c0_i32_1 = arith.constant 0 : i32
    return %c0_i32, %c0_i32_0 : i32, i32
  }
  func.func @transform_4(%arg0: i32, %arg1: i32) -> (i32, i32, i32) {
    %c0_i32 = arith.constant 0 : i32
    %c0_i32_0 = arith.constant 0 : i32
    return %arg0, %c0_i32, %arg1 : i32, i32, i32
  }
}

module attributes {stable_mosaic.version = 11 : i64} {
  func.func @_head_kernel(%arg0: i32, %arg1: memref<136x128xf32, #tpu.memory_space<vmem>>, %arg2: memref<128x128xf32, #tpu.memory_space<vmem>>, %arg3: memref<1x128xf32, #tpu.memory_space<vmem>>, %arg4: memref<8x128xf32, #tpu.memory_space<vmem>>) attributes {dimension_semantics = [#tpu.dimension_semantics<arbitrary>], iteration_bounds = array<i64: 1>, scalar_prefetch = 0 : i64, scratch_operands = 0 : i64, tpu.core_type = #tpu.core_type<tc>, window_params = [{pipeline_mode = #tpu.pipeline_mode<synchronous>, transform_indices = @transform_0, window_bounds = array<i64: 136, 128>}, {pipeline_mode = #tpu.pipeline_mode<synchronous>, transform_indices = @transform_1, window_bounds = array<i64: 128, 128>}, {pipeline_mode = #tpu.pipeline_mode<synchronous>, transform_indices = @transform_2, window_bounds = array<i64: 1, 128>}, {pipeline_mode = #tpu.pipeline_mode<synchronous>, transform_indices = @transform_3, window_bounds = array<i64: 8, 128>}]} {
    %c0 = arith.constant 0 : index
    %c0_0 = arith.constant 0 : index
    %0 = vector.load %arg1[%c0, %c0_0] : memref<136x128xf32, #tpu.memory_space<vmem>>, vector<136x128xf32>
    %c0_1 = arith.constant 0 : index
    %c0_2 = arith.constant 0 : index
    %1 = vector.load %arg2[%c0_1, %c0_2] : memref<128x128xf32, #tpu.memory_space<vmem>>, vector<128x128xf32>
    %cst = arith.constant dense<0.000000e+00> : vector<136x128xf32>
    %2 = tpu.matmul %0, %1, %cst {dimension_numbers = #tpu.dot_dimension_numbers<[1], [0], [0], [1], [0, 0, 1, 1], [], []>} : vector<136x128xf32>, vector<128x128xf32>, vector<136x128xf32> -> vector<136x128xf32>
    %c0_3 = arith.constant 0 : index
    %c0_4 = arith.constant 0 : index
    %3 = vector.load %arg3[%c0_3, %c0_4] : memref<1x128xf32, #tpu.memory_space<vmem>>, vector<1x128xf32>
    %4 = vector.broadcast %3 : vector<1x128xf32> to vector<136x128xf32>
    %5 = arith.addf %2, %4 : vector<136x128xf32>
    %6 = arith.mulf %5, %5 : vector<136x128xf32>
    %cst_5 = arith.constant dense<0.000000e+00> : vector<136xf32>
    %7 = vector.multi_reduction <add>, %6, %cst_5 [1] : vector<136x128xf32> to vector<136xf32>
    %8 = vector.shape_cast %7 : vector<136xf32> to vector<136x1xf32>
    %cst_6 = arith.constant 9.99999996E-13 : f32
    %9 = vector.broadcast %cst_6 : f32 to vector<136x1xf32>
    %10 = arith.addf %8, %9 : vector<136x1xf32>
    %11 = math.rsqrt %10 : vector<136x1xf32>
    %12 = vector.broadcast %11 : vector<136x1xf32> to vector<136x128xf32>
    %13 = arith.mulf %5, %12 : vector<136x128xf32>
    %14 = vector.extract_strided_slice %13 {offsets = [0, 0], sizes = [8, 128], strides = [1, 1]} : vector<136x128xf32> to vector<8x128xf32>
    %15 = vector.extract_strided_slice %13 {offsets = [8, 0], sizes = [128, 128], strides = [1, 1]} : vector<136x128xf32> to vector<128x128xf32>
    %cst_7 = arith.constant dense<0.000000e+00> : vector<8x128xf32>
    %16 = tpu.matmul %14, %15, %cst_7 {dimension_numbers = #tpu.dot_dimension_numbers<[1], [1], [0], [0], [0, 0, 1, 0], [], []>} : vector<8x128xf32>, vector<128x128xf32>, vector<8x128xf32> -> vector<8x128xf32>
    %c0_8 = arith.constant 0 : index
    %c0_9 = arith.constant 0 : index
    %17 = vector.load %arg4[%c0_8, %c0_9] : memref<8x128xf32, #tpu.memory_space<vmem>>, vector<8x128xf32>
    tpu.vector_store %arg4[%c0_8, %c0_9], %16 {strides = array<i32>} : memref<8x128xf32, #tpu.memory_space<vmem>>, vector<8x128xf32>,
    return
  }
  func.func @transform_0(%arg0: i32) -> (i32, i32) {
    %c0_i32 = arith.constant 0 : i32
    %c0_i32_0 = arith.constant 0 : i32
    %c0_i32_1 = arith.constant 0 : i32
    return %c0_i32, %c0_i32_0 : i32, i32
  }
  func.func @transform_1(%arg0: i32) -> (i32, i32) {
    %c0_i32 = arith.constant 0 : i32
    %c0_i32_0 = arith.constant 0 : i32
    %c0_i32_1 = arith.constant 0 : i32
    return %c0_i32, %c0_i32_0 : i32, i32
  }
  func.func @transform_2(%arg0: i32) -> (i32, i32) {
    %c0_i32 = arith.constant 0 : i32
    %c0_i32_0 = arith.constant 0 : i32
    %c0_i32_1 = arith.constant 0 : i32
    return %c0_i32, %c0_i32_0 : i32, i32
  }
  func.func @transform_3(%arg0: i32) -> (i32, i32) {
    %c0_i32 = arith.constant 0 : i32
    %c0_i32_0 = arith.constant 0 : i32
    %c0_i32_1 = arith.constant 0 : i32
    return %c0_i32, %c0_i32_0 : i32, i32
  }
}

</mosaic_0001>

<bundles_post_ra>
// kernel: snn_forward_eval.3
= control target key start
LH: loop header
LB: loop body
LE: loop exit
PB: predicated region body
PF: predicated region fallthrough
CT: control target
= control target key end

     0   :  { %s755_s15 = smov 0   ;;  %s757_s16 = smov 0   ;;  %s846_s0 = inlined_call_operand.vmem [shape: bf16[2,8,256], index: 0, kind: input, shape index: {}]   ;;  %s847_s1 = inlined_call_operand.vmem [shape: bf16[256,128], index: 1, kind: input, shape index: {}]   ;;  %s848_s2 = inlined_call_operand.vmem [shape: f32[1,128], index: 2, kind: input, shape index: {}]   ;;  %s849_s3 = inlined_call_operand.vmem [shape: f32[1,8], index: 3, kind: input, shape index: {}]   ;;  %s850_s4 = inlined_call_operand.vmem [shape: f32[2,1,128], index: 4, kind: output, shape index: {}]  }
   0x1   :  { %s759_s17 = smov 0  }
   0x2 LB: > { %s26_s18 = sadd.s32 1, %s722_s16  ;;  %p605_p0 = scmp.ge.s32.totalorder %s726_s17, 1  ;;  %s726_s17 = sphi %s759_s17, %s14_s17   ;;  %s722_s16 = sphi %s757_s16, %s852_s16   ;;  %s718_s15 = sphi %s755_s15, %s851_s15  }
   0x3   : > { %p28_p1 = scmp.ge.s32.totalorder %s26_s18, 2  ;;  %p193_p2 = scmp.lt.s32.totalorder %s726_s17, 3 }
   0x5   : > { %s854_s18 = smov (%p28_p1, %s26_s18), 0  ;;  %p194_p3 = pnand %p605_p0, %p193_p2 }
   0x6   : > { %v686_v0 = vld [vmem:[%s847_s1 + $0x40] sm:$0xff] (!%p194_p3)   ;;  %v688_v2 = vld [vmem:[%s847_s1 + $0x48] sm:$0xff] (!%p194_p3)   ;;  %p227_p4 = scmp.lt.s32.totalorder (!%p194_p3), %s718_s15, 1  ;;  %v690_v4 = vld [vmem:[%s847_s1 + $0x50] sm:$0xff] (!%p194_p3)   ;;  %v728_v19 = vmov (!%p194_p3), 0.0   ;;  %vm729_vm0 = vmmov (!%p194_p3), 0  }
   0x7   : > { %197 = sbr.rel (%p194_p3) target bundleno = 472 (0x1d8), region = 36  ;;  %v687_v1 = vld [vmem:[%s847_s1] sm:$0xff] (!%p194_p3)   ;;  %631 = vmatprep.subr.bf16.mxu0 (!%p194_p3), %v686_v0  ;;  %v689_v3 = vld [vmem:[%s847_s1 + $0x8] sm:$0xff] (!%p194_p3)   ;;  %v691_v5 = vld [vmem:[%s847_s1 + $0x10] sm:$0xff] (!%p194_p3)   ;;  %655 = vmatprep.subr.mxu1 (!%p194_p3), %v728_v19  ;;  %vm431_vm1 = vcmask (!%p194_p3), 64512  }
   0x8   : > { %632 = vmatpush3.bf16.msra.mxu0 (!%p194_p3), %v687_v1  ;;  %v692_v6 = vld [vmem:[%s847_s1 + $0x58] sm:$0xff] (!%p194_p3)   ;;  %v694_v8 = vld [vmem:[%s847_s1 + $0x60] sm:$0xff] (!%p194_p3)   ;;  %v696_v10 = vld [vmem:[%s847_s1 + $0x68] sm:$0xff] (!%p194_p3)   ;;  %657 = vmatprep.mubr.msk.f32.mxu1 (!%p194_p3), %vm729_vm0, %v728_v19 }
   0x9   : > { %633 = vmatprep.subr.bf16.mxu0 (!%p194_p3), %v688_v2  ;;  %v693_v7 = vld [vmem:[%s847_s1 + $0x18] sm:$0xff] (!%p194_p3)   ;;  %v695_v9 = vld [vmem:[%s847_s1 + $0x20] sm:$0xff] (!%p194_p3)   ;;  %v697_v13 = vld [vmem:[%s847_s1 + $0x28] sm:$0xff] (!%p194_p3)  }
   0xa   : > { %v698_v14 = vld [vmem:[%s847_s1 + $0x70] sm:$0xff] (!%p194_p3)   ;;  %v700_v16 = vld [vmem:[%s847_s1 + $0x78] sm:$0xff] (!%p194_p3)   ;;  %v608_v22 = vld [vmem:[%s848_s2] ss:$0 sm:$0xff] (!%p194_p3) }
   0xb   : > { %v699_v15 = vld [vmem:[%s847_s1 + $0x30] sm:$0xff] (!%p194_p3)   ;;  %v701_v17 = vld [vmem:[%s847_s1 + $0x38] sm:$0xff] (!%p194_p3)   ;;  %v430_v28 = vld [vmem:[%s849_s3] sm:$0x1] (!%p194_p3) }
   0xc   : > { %634 = vmatpush3.bf16.msra.mxu0 (!%p194_p3), %v689_v3 }
   0xd   : > { %635 = vmatprep.subr.bf16.mxu0 (!%p194_p3), %v690_v4 }
   0xe   : > { %s856_s15 = smov (!%p227_p4, %s718_s15), 1 }
   0xf   : > { %s630_s7 = sshll.u32 %s856_s15, 3  ;;  %s244_s13 = scalar_lea.vmem %s850_s4, %s856_s15 }
  0x10   : > { %636 = vmatpush3.bf16.msra.mxu0 %v691_v5  ;;  %s231_s14 = scalar_lea.vmem %s846_s0, %s630_s7 }
  0x11   : > { %637 = vmatprep.subr.bf16.mxu0 %v692_v6  ;;  %v246_v11 = vld [vmem:[%s231_s14] sm:$0xff] }
  0x12   : > { %v610_v12 = vcombine.high %v246_v11, %v246_v11  ;;  %v609_v18 = vcombine.low %v246_v11, %v246_v11 }
  0x14   : > { %638 = vmatpush3.bf16.msra.mxu0 %v693_v7  ;;  %421 = vmatprep.mubr.bf16.mxu0 %v610_v12 }
  0x15   : > { %639 = vmatprep.subr.bf16.mxu0 %v694_v8 }
  0x18   : > { %640 = vmatpush3.bf16.msra.mxu0 %v695_v9 }
  0x19   : > { %641 = vmatprep.subr.bf16.mxu0 %v696_v10 }
  0x1c   : > { %642 = vmatpush3.bf16.msra.mxu0 %v697_v13 }
  0x1d   : > { %643 = vmatprep.subr.bf16.mxu0 %v698_v14 }
  0x20   : > { %644 = vmatpush3.bf16.msra.mxu0 %v699_v15 }
  0x21   : > { %645 = vmatprep.subr.bf16.mxu0 %v700_v16 }
  0x24   : > { %646 = vmatpush3.bf16.msra.mxu0 %v701_v17 }
  0x27   : > { %422 = vmatmul.mubr.bf16.vlgmr.msra.gmra.mrb[0].mxu0 %v609_v18 }
  0xfa   : > { %v647_v20 = vpop.f32.mrb[0].mxu0 }
  0xfb   : > { %v648_v21 = vpop.f32.mrb[1].mxu0 }
  0xfc   : > { %v649_v23 = vadd.f32 %v648_v21, %v647_v20  ;;  %v650_v24 = vpop.f32.mrb[2].mxu0 }
  0xfd   : > { %v651_v25 = vpop.f32.mrb[3].mxu0 }
  0xfe   : > { %v424_v26 = vadd.f32 %v649_v23, %v608_v22 }
 0x100   : > { %v429_v27 = vmax.f32 %v424_v26, 0.0 }
 0x102   : > { %656 = vmatpush3.msra.mxu1 %v429_v27 }
 0x103   : > { %658 = vmatmul.mubr.msk.f32.vlgmr.msra.gmra.mrb[0].mxu1 %vm431_vm1, %v430_v28 }
 0x1d6   : > { %v501_v29 = vpop.f32.mrb[0].mxu1 }
 0x1d7   : > { %505 = vst [vmem:[%s244_s13] sm:$0x1] %v501_v29  ;;  %v659_v30 = vpop.f32.mrb[1].mxu1 }
 0x1d8 PF: > { %s14_s17 = sadd.s32 1, %s726_s17   ;;  %s851_s15 = smov %s722_s16 }
 0x1d9   : > { %p11_p5 = scmp.ge.s32.totalorder %s14_s17, 4   ;;  %s852_s16 = smov %s854_s18 }
 0x1db   :  { %13 = sbr.rel (!%p11_p5) target bundleno = 2 (0x2), region = 72 }

// kernel: snn_forward_eval.5
= control target key start
LH: loop header
LB: loop body
LE: loop exit
PB: predicated region body
PF: predicated region fallthrough
CT: control target
= control target key end

     0   :  { %v635_v0 = vmov 0.0|0.0   ;;  %vm636_vm0 = vmmov 0   ;;  %v637_v4 = vmov 0.0   ;;  %s922_s1 = inlined_call_operand.vmem [shape: f32[128,128], index: 1, kind: input, shape index: {}]   ;;  %s923_s0 = inlined_call_operand.vmem [shape: f32[136,128], index: 0, kind: input, shape index: {}]   ;;  %s924_s2 = inlined_call_operand.vmem [shape: f32[1,128], index: 2, kind: input, shape index: {}]   ;;  %s925_s3 = inlined_call_operand.vmem [shape: f32[8,128], index: 3, kind: output, shape index: {}]  }
   0x1   :  { %550 = vmatprep.subr.bf16.mxu0 %v635_v0  ;;  %v31_v1 = vld [vmem:[%s922_s1] sm:$0xff]  ;;  %v32_v2 = vld [vmem:[%s922_s1 + $0x8] sm:$0xff]  ;;  %v33_v3 = vld [vmem:[%s922_s1 + $0x10] sm:$0xff]  ;;  %464 = vmatprep.mubr.msk.f32.mxu0 %vm636_vm0, %v637_v4 }
   0x2   :  { %v551_v5 = vpack.c.bf16 %v32_v2, %v31_v1  ;;  %v34_v6 = vld [vmem:[%s922_s1 + $0x18] sm:$0xff]  ;;  %574 = vmatprep.subr.bf16.mxu1 %v635_v0  ;;  %547 = vmatprep.mubr.msk.f32.mxu1 %vm636_vm0, %v637_v4  ;;  %v35_v8 = vld [vmem:[%s922_s1 + $0x20] sm:$0xff]  ;;  %v36_v9 = vld [vmem:[%s922_s1 + $0x28] sm:$0xff] }
   0x3   :  { %v554_v7 = vpack.c.bf16 %v34_v6, %v33_v3  ;;  %v557_v10 = vpack.c.bf16 %v36_v9, %v35_v8  ;;  %v37_v11 = vld [vmem:[%s922_s1 + $0x30] sm:$0xff]  ;;  %v38_v12 = vld [vmem:[%s922_s1 + $0x38] sm:$0xff]  ;;  %v39_v14 = vld [vmem:[%s922_s1 + $0x40] sm:$0xff] }
   0x4   :  { %552 = vmatpush3.bf16.msra.mxu0 %v551_v5  ;;  %v560_v13 = vpack.c.bf16 %v38_v12, %v37_v11  ;;  %v40_v15 = vld [vmem:[%s922_s1 + $0x48] sm:$0xff]  ;;  %v41_v17 = vld [vmem:[%s922_s1 + $0x50] sm:$0xff]  ;;  %v42_v18 = vld [vmem:[%s922_s1 + $0x58] sm:$0xff] }
   0x5   :  { %553 = vmatprep.subr.bf16.mxu0 %v635_v0  ;;  %v563_v16 = vpack.c.bf16 %v40_v15, %v39_v14  ;;  %v566_v19 = vpack.c.bf16 %v42_v18, %v41_v17  ;;  %v43_v20 = vld [vmem:[%s922_s1 + $0x60] sm:$0xff]  ;;  %v44_v21 = vld [vmem:[%s922_s1 + $0x68] sm:$0xff]  ;;  %v45_v23 = vld [vmem:[%s922_s1 + $0x70] sm:$0xff] }
   0x6   :  { %v569_v22 = vpack.c.bf16 %v44_v21, %v43_v20  ;;  %v46_v24 = vld [vmem:[%s922_s1 + $0x78] sm:$0xff]  ;;  %v14_v26 = vld [vmem:[%s923_s0] sm:$0xff]  ;;  %v15_v27 = vld [vmem:[%s923_s0 + $0x8] sm:$0xff] }
   0x7   :  { %v572_v25 = vpack.c.bf16 %v46_v24, %v45_v23  ;;  %v16_v28 = vld [vmem:[%s923_s0 + $0x10] sm:$0xff]  ;;  %v17_v29 = vld [vmem:[%s923_s0 + $0x18] sm:$0xff]  ;;  %v18_v30 = vld [vmem:[%s923_s0 + $0x20] sm:$0xff] }
   0x8   :  { %555 = vmatpush3.bf16.msra.mxu0 %v554_v7  ;;  %v19_v31 = vld [vmem:[%s923_s0 + $0x28] sm:$0xff]  ;;  %v20_v32 = vld [vmem:[%s923_s0 + $0x30] sm:$0xff]  ;;  %v21_v33 = vld [vmem:[%s923_s0 + $0x38] sm:$0xff] }
   0x9   :  { %556 = vmatprep.subr.bf16.mxu0 %v635_v0  ;;  %v22_v34 = vld [vmem:[%s923_s0 + $0x40] sm:$0xff]  ;;  %v23_v35 = vld [vmem:[%s923_s0 + $0x48] sm:$0xff]  ;;  %v24_v36 = vld [vmem:[%s923_s0 + $0x50] sm:$0xff] }
   0xa   :  { %v25_v37 = vld [vmem:[%s923_s0 + $0x58] sm:$0xff]  ;;  %v26_v38 = vld [vmem:[%s923_s0 + $0x60] sm:$0xff]  ;;  %v27_v39 = vld [vmem:[%s923_s0 + $0x68] sm:$0xff] }
   0xb   :  { %v28_v40 = vld [vmem:[%s923_s0 + $0x70] sm:$0xff]  ;;  %v29_v41 = vld [vmem:[%s923_s0 + $0x78] sm:$0xff]  ;;  %v30_v42 = vld [vmem:[%s923_s0 + $0x80] sm:$0xff] }
   0xc   :  { %558 = vmatpush3.bf16.msra.mxu0 %v557_v10  ;;  %v807_v45 = vld [vmem:[%s924_s2] ss:$0 sm:$0xff] }
   0xd   :  { %559 = vmatprep.subr.bf16.mxu0 %v635_v0 }
  0x10   :  { %561 = vmatpush3.bf16.msra.mxu0 %v560_v13 }
  0x11   :  { %562 = vmatprep.subr.bf16.mxu0 %v635_v0 }
  0x14   :  { %564 = vmatpush3.bf16.msra.mxu0 %v563_v16 }
  0x15   :  { %565 = vmatprep.subr.bf16.mxu0 %v635_v0 }
  0x18   :  { %567 = vmatpush3.bf16.msra.mxu0 %v566_v19 }
  0x19   :  { %568 = vmatprep.subr.bf16.mxu0 %v635_v0 }
  0x1c   :  { %570 = vmatpush3.bf16.msra.mxu0 %v569_v22 }
  0x1d   :  { %571 = vmatprep.subr.bf16.mxu0 %v635_v0 }
  0x20   :  { %573 = vmatpush3.bf16.msra.mxu0 %v572_v25 }
  0x23   :  { %465 = vmatmul.mubr.f32.vlgmr.msra.gmra.mrb[0].mxu0 %v14_v26 }
  0x24   :  { %467 = vmatprep.mubr.msk.f32.mxu0 %vm636_vm0, %v637_v4 }
  0x27   :  { %468 = vmatmul.mubr.f32.gmra.mrb[2].mxu0 %v15_v27 }
  0x28   :  { %470 = vmatprep.mubr.msk.f32.mxu0 %vm636_vm0, %v637_v4 }
  0x2b   :  { %471 = vmatmul.mubr.f32.gmra.mrb[4].mxu0 %v16_v28 }
  0x2c   :  { %473 = vmatprep.mubr.msk.f32.mxu0 %vm636_vm0, %v637_v4 }
  0x2f   :  { %474 = vmatmul.mubr.f32.gmra.mrb[6].mxu0 %v17_v29 }
  0x30   :  { %476 = vmatprep.mubr.msk.f32.mxu0 %vm636_vm0, %v637_v4 }
  0x33   :  { %477 = vmatmul.mubr.f32.gmra.mrb[8].mxu0 %v18_v30 }
  0x34   :  { %479 = vmatprep.mubr.msk.f32.mxu0 %vm636_vm0, %v637_v4 }
  0x37   :  { %480 = vmatmul.mubr.f32.gmra.mrb[10].mxu0 %v19_v31 }
  0x38   :  { %482 = vmatprep.mubr.msk.f32.mxu0 %vm636_vm0, %v637_v4 }
  0x3b   :  { %483 = vmatmul.mubr.f32.gmra.mrb[12].mxu0 %v20_v32 }
  0x3c   :  { %485 = vmatprep.mubr.msk.f32.mxu0 %vm636_vm0, %v637_v4 }
  0x3f   :  { %486 = vmatmul.mubr.f32.gmra.mrb[14].mxu0 %v21_v33 }
  0x40   :  { %488 = vmatprep.mubr.msk.f32.mxu0 %vm636_vm0, %v637_v4 }
  0x43   :  { %489 = vmatmul.mubr.f32.gmra.mrb[16].mxu0 %v22_v34 }
  0x44   :  { %491 = vmatprep.mubr.msk.f32.mxu0 %vm636_vm0, %v637_v4 }
  0x47   :  { %492 = vmatmul.mubr.f32.gmra.mrb[18].mxu0 %v23_v35 }
  0x48   :  { %494 = vmatprep.mubr.msk.f32.mxu0 %vm636_vm0, %v637_v4 }
  0x4b   :  { %495 = vmatmul.mubr.f32.gmra.mrb[20].mxu0 %v24_v36 }
  0x4c   :  { %497 = vmatprep.mubr.msk.f32.mxu0 %vm636_vm0, %v637_v4 }
  0x4f   :  { %498 = vmatmul.mubr.f32.gmra.mrb[22].mxu0 %v25_v37 }
  0x50   :  { %500 = vmatprep.mubr.msk.f32.mxu0 %vm636_vm0, %v637_v4 }
  0x53   :  { %501 = vmatmul.mubr.f32.gmra.mrb[24].mxu0 %v26_v38 }
  0x54   :  { %503 = vmatprep.mubr.msk.f32.mxu0 %vm636_vm0, %v637_v4 }
  0x57   :  { %504 = vmatmul.mubr.f32.gmra.mrb[26].mxu0 %v27_v39 }
  0x58   :  { %506 = vmatprep.mubr.msk.f32.mxu0 %vm636_vm0, %v637_v4 }
  0x5b   :  { %507 = vmatmul.mubr.f32.gmra.mrb[28].mxu0 %v28_v40 }
  0x5c   :  { %509 = vmatprep.mubr.msk.f32.mxu0 %vm636_vm0, %v637_v4 }
  0x5f   :  { %510 = vmatmul.mubr.f32.gmra.mrb[30].mxu0 %v29_v41 }
  0x60   :  { %512 = vmatprep.mubr.msk.f32.mxu0 %vm636_vm0, %v637_v4 }
  0x63   :  { %513 = vmatmul.mubr.f32.gmra.mrb[32].mxu0 %v30_v42 }
  0xf6   :  { %v802_v43 = vpop.f32.mrb[0].mxu0 }
  0xf7   :  { %v466_v44 = vpop.f32.mrb[1].mxu0  ;;  %v884_v42 = vadd.f32 %v807_v45, %v802_v43 }
  0xfa   :  { %v125_v46 = vpop.f32.mrb[2].mxu0 }
  0xfb   :  { %v810_v47 = vadd.f32 %v807_v45, %v125_v46  ;;  %v469_v48 = vpop.f32.mrb[3].mxu0 }
  0xfd   :  { %v205_v49 = vmul.f32 %v810_v47, %v810_v47 }
  0xfe   :  { %v130_v50 = vpop.f32.mrb[4].mxu0 }
  0xff   :  { %v815_v51 = vadd.f32 %v807_v45, %v130_v50  ;;  %223 = vadd.xlane.f32.xlu0 %v205_v49  ;;  %v472_v52 = vpop.f32.mrb[5].mxu0  ;;  %v204_v50 = vmul.f32 %v884_v42, %v884_v42 }
 0x101   :  { %v206_v53 = vmul.f32 %v815_v51, %v815_v51 }
 0x102   :  { %v135_v54 = vpop.f32.mrb[6].mxu0 }
 0x103   :  { %v820_v55 = vadd.f32 %v807_v45, %v135_v54  ;;  %225 = vadd.xlane.f32.xlu0 %v206_v53  ;;  %v475_v56 = vpop.f32.mrb[7].mxu0 }
 0x105   :  { %v207_v57 = vmul.f32 %v820_v55, %v820_v55 }
 0x106   :  { %v140_v58 = vpop.f32.mrb[8].mxu0 }
 0x107   :  { %v825_v59 = vadd.f32 %v807_v45, %v140_v58  ;;  %227 = vadd.xlane.f32.xlu1 %v207_v57  ;;  %v478_v60 = vpop.f32.mrb[9].mxu0 }
 0x109   :  { %v208_v61 = vmul.f32 %v825_v59, %v825_v59 }
 0x10a   :  { %v145_v62 = vpop.f32.mrb[10].mxu0 }
 0x10b   :  { %v830_v63 = vadd.f32 %v807_v45, %v145_v62  ;;  %229 = vadd.xlane.f32.xlu1 %v208_v61  ;;  %v481_v1 = vpop.f32.mrb[11].mxu0 }
 0x10d   :  { %v209_v2 = vmul.f32 %v830_v63, %v830_v63 }
 0x10e   :  { %v150_v3 = vpop.f32.mrb[12].mxu0 }
 0x10f   :  { %v835_v4 = vadd.f32 %v807_v45, %v150_v3  ;;  %231 = vadd.xlane.f32.xlu0 %v209_v2  ;;  %v484_v5 = vpop.f32.mrb[13].mxu0 }
 0x111   :  { %v210_v6 = vmul.f32 %v835_v4, %v835_v4 }
 0x112   :  { %v155_v7 = vpop.f32.mrb[14].mxu0 }
 0x113   :  { %v840_v8 = vadd.f32 %v807_v45, %v155_v7  ;;  %233 = vadd.xlane.f32.xlu1 %v210_v6  ;;  %v487_v9 = vpop.f32.mrb[15].mxu0 }
 0x115   :  { %v211_v10 = vmul.f32 %v840_v8, %v840_v8 }
 0x116   :  { %v160_v11 = vpop.f32.mrb[16].mxu0 }
 0x117   :  { %v845_v12 = vadd.f32 %v807_v45, %v160_v11  ;;  %235 = vadd.xlane.f32.xlu0 %v211_v10  ;;  %v490_v13 = vpop.f32.mrb[17].mxu0 }
 0x119   :  { %v212_v14 = vmul.f32 %v845_v12, %v845_v12 }
 0x11a   :  { %v165_v15 = vpop.f32.mrb[18].mxu0 }
 0x11b   :  { %v850_v16 = vadd.f32 %v807_v45, %v165_v15  ;;  %237 = vadd.xlane.f32.xlu1 %v212_v14  ;;  %v493_v17 = vpop.f32.mrb[19].mxu0 }
 0x11d   :  { %v213_v18 = vmul.f32 %v850_v16, %v850_v16 }
 0x11e   :  { %v170_v19 = vpop.f32.mrb[20].mxu0 }
 0x11f   :  { %v855_v20 = vadd.f32 %v807_v45, %v170_v19  ;;  %239 = vadd.xlane.f32.xlu0 %v213_v18  ;;  %v496_v21 = vpop.f32.mrb[21].mxu0 }
 0x121   :  { %v214_v22 = vmul.f32 %v855_v20, %v855_v20 }
 0x122   :  { %v175_v23 = vpop.f32.mrb[22].mxu0 }
 0x123   :  { %v860_v24 = vadd.f32 %v807_v45, %v175_v23  ;;  %241 = vadd.xlane.f32.xlu1 %v214_v22  ;;  %v499_v25 = vpop.f32.mrb[23].mxu0 }
 0x125   :  { %v215_v26 = vmul.f32 %v860_v24, %v860_v24 }
 0x126   :  { %v180_v27 = vpop.f32.mrb[24].mxu0 }
 0x127   :  { %v865_v28 = vadd.f32 %v807_v45, %v180_v27  ;;  %243 = vadd.xlane.f32.xlu0 %v215_v26  ;;  %v502_v29 = vpop.f32.mrb[25].mxu0 }
 0x129   :  { %v216_v30 = vmul.f32 %v865_v28, %v865_v28 }
 0x12a   :  { %v185_v31 = vpop.f32.mrb[26].mxu0 }
 0x12b   :  { %v870_v32 = vadd.f32 %v807_v45, %v185_v31  ;;  %245 = vadd.xlane.f32.xlu1 %v216_v30  ;;  %v505_v33 = vpop.f32.mrb[27].mxu0 }
 0x12d   :  { %v217_v34 = vmul.f32 %v870_v32, %v870_v32 }
 0x12e   :  { %v190_v35 = vpop.f32.mrb[28].mxu0 }
 0x12f   :  { %v875_v36 = vadd.f32 %v807_v45, %v190_v35  ;;  %247 = vadd.xlane.f32.xlu0 %v217_v34  ;;  %v508_v37 = vpop.f32.mrb[29].mxu0 }
 0x131   :  { %v218_v38 = vmul.f32 %v875_v36, %v875_v36 }
 0x132   :  { %v195_v39 = vpop.f32.mrb[30].mxu0 }
 0x133   :  { %v880_v40 = vadd.f32 %v807_v45, %v195_v39  ;;  %249 = vadd.xlane.f32.xlu1 %v218_v38  ;;  %v511_v41 = vpop.f32.mrb[31].mxu0 }
 0x135   :  { %v219_v44 = vmul.f32 %v880_v40, %v880_v40 }
 0x136   :  { %v200_v46 = vpop.f32.mrb[32].mxu0 }
 0x137   :  { %v889_v48 = vadd.f32 %v807_v45, %v200_v46  ;;  %251 = vadd.xlane.f32.xlu0 %v219_v44  ;;  %v514_v49 = vpop.f32.mrb[33].mxu0 }
 0x139   :  { %v220_v52 = vmul.f32 %v889_v48, %v889_v48 }
 0x13b   :  { %221 = vadd.xlane.f32.xlu0 %v204_v50  ;;  %253 = vadd.xlane.f32.xlu1 %v220_v52 }
 0x18c   :  { %v224_v53 = vpop.xlane.xlu0 %223 }
 0x18d   :  { %v256_v43 = vadd.f32 1e-12, %v224_v53 }
 0x18f   :  { %601 = vrsqrt.f32 %v256_v43 }
 0x190   :  { %v226_v54 = vpop.xlane.xlu0 %225 }
 0x191   :  { %v257_v56 = vadd.f32 1e-12, %v226_v54 }
 0x193   :  { %603 = vrsqrt.f32 %v257_v56 }
 0x194   :  { %v228_v57 = vpop.xlane.xlu1 %227 }
 0x195   :  { %v258_v58 = vadd.f32 1e-12, %v228_v57 }
 0x197   :  { %605 = vrsqrt.f32 %v258_v58 }
 0x198   :  { %v230_v45 = vpop.xlane.xlu1 %229 }
 0x199   :  { %v259_v60 = vadd.f32 1e-12, %v230_v45  ;;  %v602_v61 = vpop.eup %601 }
 0x19a   :  { %v290_v3 = vmul.f32 %v602_v61, %v810_v47 }
 0x19b   :  { %607 = vrsqrt.f32 %v259_v60 }
 0x19c   :  { %v232_v62 = vpop.xlane.xlu0 %231 }
 0x19d   :  { %v604_v1 = vpop.eup %603  ;;  %v260_v2 = vadd.f32 1e-12, %v232_v62 }
 0x19e   :  { %v291_v5 = vmul.f32 %v604_v1, %v815_v51 }
 0x19f   :  { %609 = vrsqrt.f32 %v260_v2 }
 0x1a0   :  { %v234_v6 = vpop.xlane.xlu1 %233  ;;  %v575_v7 = vpack.c.bf16 %v291_v5, %v290_v3 }
 0x1a1   :  { %v261_v9 = vadd.f32 1e-12, %v234_v6  ;;  %v606_v10 = vpop.eup %605 }
 0x1a2   :  { %576 = vmatpush3.bf16.xpose.msra.mxu1 %v575_v7  ;;  %v292_v15 = vmul.f32 %v606_v10, %v820_v55 }
 0x1a3   :  { %611 = vrsqrt.f32 %v261_v9  ;;  %577 = vmatprep.subr.bf16.mxu1 %v635_v0 }
 0x1a4   :  { %v236_v11 = vpop.xlane.xlu0 %235 }
 0x1a5   :  { %v608_v13 = vpop.eup %607  ;;  %v262_v14 = vadd.f32 1e-12, %v236_v11 }
 0x1a6   :  { %v293_v17 = vmul.f32 %v608_v13, %v825_v59 }
 0x1a7   :  { %613 = vrsqrt.f32 %v262_v14 }
 0x1a8   :  { %v238_v18 = vpop.xlane.xlu1 %237  ;;  %v578_v47 = vpack.c.bf16 %v293_v17, %v292_v15 }
 0x1a9   :  { %v263_v51 = vadd.f32 1e-12, %v238_v18  ;;  %v610_v19 = vpop.eup %609 }
 0x1aa   :  { %579 = vmatpush3.bf16.xpose.msra.mxu1 %v578_v47  ;;  %v294_v25 = vmul.f32 %v610_v19, %v830_v63 }
 0x1ab   :  { %615 = vrsqrt.f32 %v263_v51  ;;  %580 = vmatprep.subr.bf16.mxu1 %v635_v0 }
 0x1ac   :  { %v240_v21 = vpop.xlane.xlu0 %239 }
 0x1ad   :  { %v612_v22 = vpop.eup %611  ;;  %v264_v23 = vadd.f32 1e-12, %v240_v21 }
 0x1ae   :  { %v295_v26 = vmul.f32 %v612_v22, %v835_v4 }
 0x1af   :  { %617 = vrsqrt.f32 %v264_v23 }
 0x1b0   :  { %v242_v27 = vpop.xlane.xlu1 %241  ;;  %v581_v55 = vpack.c.bf16 %v295_v26, %v294_v25 }
 0x1b1   :  { %v265_v59 = vadd.f32 1e-12, %v242_v27  ;;  %v614_v29 = vpop.eup %613 }
 0x1b2   :  { %582 = vmatpush3.bf16.xpose.msra.mxu1 %v581_v55  ;;  %v296_v34 = vmul.f32 %v614_v29, %v840_v8 }
 0x1b3   :  { %619 = vrsqrt.f32 %v265_v59  ;;  %583 = vmatprep.subr.bf16.mxu1 %v635_v0 }
 0x1b4   :  { %v244_v30 = vpop.xlane.xlu0 %243 }
 0x1b5   :  { %v616_v31 = vpop.eup %615  ;;  %v266_v33 = vadd.f32 1e-12, %v244_v30 }
 0x1b6   :  { %v297_v35 = vmul.f32 %v616_v31, %v845_v12 }
 0x1b7   :  { %621 = vrsqrt.f32 %v266_v33 }
 0x1b8   :  { %v246_v37 = vpop.xlane.xlu1 %245  ;;  %v584_v63 = vpack.c.bf16 %v297_v35, %v296_v34 }
 0x1b9   :  { %v267_v4 = vadd.f32 1e-12, %v246_v37  ;;  %v618_v38 = vpop.eup %617 }
 0x1ba   :  { %585 = vmatpush3.bf16.xpose.msra.mxu1 %v584_v63  ;;  %v298_v46 = vmul.f32 %v618_v38, %v850_v16 }
 0x1bb   :  { %623 = vrsqrt.f32 %v267_v4  ;;  %586 = vmatprep.subr.bf16.mxu1 %v635_v0 }
 0x1bc   :  { %v248_v39 = vpop.xlane.xlu0 %247 }
 0x1bd   :  { %v620_v41 = vpop.eup %619  ;;  %v268_v44 = vadd.f32 1e-12, %v248_v39 }
 0x1be   :  { %v299_v49 = vmul.f32 %v620_v41, %v855_v20 }
 0x1bf   :  { %625 = vrsqrt.f32 %v268_v44 }
 0x1c0   :  { %v250_v50 = vpop.xlane.xlu1 %249  ;;  %v587_v8 = vpack.c.bf16 %v299_v49, %v298_v46 }
 0x1c1   :  { %v269_v12 = vadd.f32 1e-12, %v250_v50  ;;  %v622_v52 = vpop.eup %621 }
 0x1c2   :  { %588 = vmatpush3.bf16.xpose.msra.mxu1 %v587_v8  ;;  %v300_v56 = vmul.f32 %v622_v52, %v860_v24 }
 0x1c3   :  { %627 = vrsqrt.f32 %v269_v12  ;;  %589 = vmatprep.subr.bf16.mxu1 %v635_v0 }
 0x1c4   :  { %v252_v53 = vpop.xlane.xlu0 %251 }
 0x1c5   :  { %v624_v43 = vpop.eup %623  ;;  %v270_v54 = vadd.f32 1e-12, %v252_v53 }
 0x1c6   :  { %v301_v57 = vmul.f32 %v624_v43, %v865_v28 }
 0x1c7   :  { %629 = vrsqrt.f32 %v270_v54 }
 0x1c8   :  { %v254_v58 = vpop.xlane.xlu1 %253  ;;  %v590_v16 = vpack.c.bf16 %v301_v57, %v300_v56  ;;  %v222_v60 = vpop.xlane.xlu0 %221 }
 0x1c9   :  { %v271_v45 = vadd.f32 1e-12, %v254_v58  ;;  %v626_v20 = vpop.eup %625  ;;  %v255_v2 = vadd.f32 1e-12, %v222_v60 }
 0x1ca   :  { %591 = vmatpush3.bf16.xpose.msra.mxu1 %v590_v16  ;;  %v302_v62 = vmul.f32 %v626_v20, %v870_v32 }
 0x1cb   :  { %592 = vmatprep.subr.bf16.mxu1 %v635_v0  ;;  %631 = vrsqrt.f32 %v271_v45 }
 0x1cc   :  { %633 = vrsqrt.f32 %v255_v2 }
 0x1cd   :  { %v628_v61 = vpop.eup %627 }
 0x1ce   :  { %v303_v1 = vmul.f32 %v628_v61, %v875_v36 }
 0x1d0   :  { %v593_v3 = vpack.c.bf16 %v303_v1, %v302_v62 }
 0x1d1   :  { %v630_v24 = vpop.eup %629 }
 0x1d2   :  { %594 = vmatpush3.bf16.xpose.msra.mxu1 %v593_v3  ;;  %v304_v5 = vmul.f32 %v630_v24, %v880_v40 }
 0x1d3   :  { %595 = vmatprep.subr.bf16.mxu1 %v635_v0 }
 0x1d5   :  { %v632_v28 = vpop.eup %631 }
 0x1d6   :  { %v305_v6 = vmul.f32 %v632_v28, %v889_v48  ;;  %v634_v9 = vpop.eup %633 }
 0x1d7   :  { %v289_v10 = vmul.f32 %v634_v9, %v884_v42 }
 0x1d8   :  { %v596_v7 = vpack.c.bf16 %v305_v6, %v304_v5 }
 0x1da   :  { %597 = vmatpush3.bf16.xpose.msra.mxu1 %v596_v7 }
 0x1e1   :  { %548 = vmatmul.mubr.f32.vlgmr.msra.gmra.mrb[0].mxu1 %v289_v10 }
 0x2b4   :  { %v372_v32 = vpop.f32.mrb[0].mxu1 }
 0x2b5   :  { %376 = vst [vmem:[%s925_s3] sm:$0xff] %v372_v32  ;;  %v549_v36 = vpop.f32.mrb[1].mxu1 }

</bundles_post_ra>
